<compile_context>
chip_gen: v5e
topology: v5e:2x2
jax: 0.10.0
libtpu: 0.0.40
codegen_flags: <defaults>
</compile_context>

<pallas_src>
import math

import jax
import jax.numpy as jnp
from jax import lax
from jax.experimental import pallas as pl
from jax.experimental.pallas import tpu as pltpu


def _gelu_exact(x):
    # BERT's ACT2FN["gelu"]: 0.5 * x * (1 + erf(x / sqrt(2)))  (erf-based, not tanh approx)
    return 0.5 * x * (1.0 + lax.erf(x * (1.0 / math.sqrt(2.0))))


def adapter_kernel(x_ref, wd_ref, bd_ref, wu_ref, bu_ref, o_ref):
    """One row-tile of the adapter forward.

    x_ref : (tm, H)      input rows (f32 or bf16)
    wd_ref: (H, A_pad)   down-projection weight (pre-transposed [in, out], zero-padded)
    bd_ref: (1, A_pad)   down-projection bias (zero-padded)
    wu_ref: (A_pad, H)   up-projection weight (pre-transposed [in, out], zero-padded rows)
    bu_ref: (1, H)       up-projection bias
    o_ref : (tm, H)      output rows (hidden + up_projected)
    """
    x = x_ref[...]  # native dtype — MXU-native bf16 when inputs are bf16

    # down_project: x @ Wd + bd   (MXU matmul, f32 accumulate; bias/GELU in f32)
    down = jnp.dot(x, wd_ref[...], preferred_element_type=jnp.float32)
    down = down + bd_ref[...].astype(jnp.float32)

    # activation (GELU, erf form) in f32
    act = _gelu_exact(down)

    # up_project: act @ Wu + bu (feed activations at the weight dtype so the MXU
    # stays bf16-native when the weights are bf16; f32 accumulate)
    up = jnp.dot(act.astype(wu_ref.dtype), wu_ref[...],
                 preferred_element_type=jnp.float32)
    up = up + bu_ref[...].astype(jnp.float32)

    # residual add in f32, single cast at the store
    o_ref[...] = (x.astype(jnp.float32) + up).astype(o_ref.dtype)


def _round_up(n, m):
    return ((n + m - 1) // m) * m


def bert_adapter(hidden_states, wd_t, bd, wu_t, bu, *,
                 tm=256, adapter_pad=128, vmem_limit_bytes=None):
    """hidden_states: [B, S, H]. Weights pre-transposed to [in, out]. Returns [B, S, H]."""
    B, S, H = hidden_states.shape
    A = wd_t.shape[1]
    M = B * S

    # --- lane-align the adapter dim (exact: zero columns contribute nothing) ---
    A_pad = _round_up(A, adapter_pad)
    if A_pad != A:
        wd_t = jnp.pad(wd_t, ((0, 0), (0, A_pad - A)))
        bd = jnp.pad(bd, ((0, A_pad - A),))
        wu_t = jnp.pad(wu_t, ((0, A_pad - A), (0, 0)))

    x2d = hidden_states.reshape(M, H)
    bd2d = bd.reshape(1, A_pad)
    bu2d = bu.reshape(1, H)

    # --- row tiling: large tiles, pad M to a whole number of tiles ---
    tm_eff = _round_up(min(tm, _round_up(M, 8)), 8)
    M_pad = _round_up(M, tm_eff)
    if M_pad != M:
        x2d = jnp.pad(x2d, ((0, M_pad - M), (0, 0)))
    grid = (M_pad // tm_eff,)

    # --- VMEM budget: double-buffered x/out tiles + (worst case double-buffered) weights ---
    if vmem_limit_bytes is None:
        io_bytes = 2 * 2 * tm_eff * H * x2d.dtype.itemsize
        w_bytes = 2 * (H * A_pad + A_pad * H + A_pad + H) * wd_t.dtype.itemsize
        vmem_limit_bytes = int(min(max(2 * (io_bytes + w_bytes), 32 << 20), 48 << 20))

    def call(single_buffer_weights):
        def w_spec(shape):
            # Weights never change across the grid -> single-buffer them to save VMEM.
            if single_buffer_weights:
                return pl.BlockSpec(shape, lambda i: (0, 0),
                                    pipeline_mode=pl.Buffered(1))
            return pl.BlockSpec(shape, lambda i: (0, 0))

        return pl.pallas_call(
            adapter_kernel,
            out_shape=jax.ShapeDtypeStruct((M_pad, H), hidden_states.dtype),
            grid_spec=pltpu.PrefetchScalarGridSpec(
                num_scalar_prefetch=0,
                grid=grid,
                in_specs=[
                    pl.BlockSpec((tm_eff, H), lambda i: (i, 0)),  # x row tile
                    w_spec((H, A_pad)),                           # Wd^T (resident)
                    w_spec((1, A_pad)),                           # bd
                    w_spec((A_pad, H)),                           # Wu^T (resident)
                    w_spec((1, H)),                               # bu
                ],
                out_specs=pl.BlockSpec((tm_eff, H), lambda i: (i, 0)),
            ),
            compiler_params=pltpu.CompilerParams(
                dimension_semantics=("parallel",),   # row axis -> 2-TC split on v7x
                vmem_limit_bytes=vmem_limit_bytes,
            ),
        )(x2d, wd_t, bd2d, wu_t, bu2d)

    try:
        out2d = call(single_buffer_weights=True)
    except Exception:
        # Fallback if pipeline_mode=pl.Buffered(1) is unsupported on this jax version.
        out2d = call(single_buffer_weights=False)

    return out2d[:M].reshape(B, S, H)


def init_params(key, hidden_size, adapter_size, initializer_range):
    """Deterministic synthetic init matching the PyTorch module's __init__."""
    k_down, k_up = jax.random.split(key)
    # PyTorch Linear weight shape is [out, in]; we store the transpose [in, out].
    wd = jax.random.normal(k_down, (adapter_size, hidden_size), jnp.float32) * initializer_range
    wu = jax.random.normal(k_up, (hidden_size, adapter_size), jnp.float32) * initializer_range
    bd = jnp.zeros((adapter_size,), jnp.float32)
    bu = jnp.zeros((hidden_size,), jnp.float32)
    return wd.T, bd, wu.T, bu


def reference(hidden_states, wd_t, bd, wu_t, bu):
    down = hidden_states @ wd_t + bd
    act = _gelu_exact(down)
    up = act @ wu_t + bu
    return hidden_states + up


if __name__ == "__main__":
    # Small shapes consistent with the module's forward:
    # hidden_states: [batch=2, seq=8, hidden=32], adapter_size=16
    B, S, H, A = 2, 8, 32, 16
    init_range = 0.02

    key = jax.random.PRNGKey(0)
    k_x, k_p = jax.random.split(key)

    hidden_states = jax.random.normal(k_x, (B, S, H), jnp.float32)
    wd_t, bd, wu_t, bu = init_params(k_p, H, A, init_range)

    # f32 path — tight check vs pure-JAX reference (unpadded weights)
    out = bert_adapter(hidden_states, wd_t, bd, wu_t, bu)
    out = jax.block_until_ready(out)
    ref = reference(hidden_states, wd_t, bd, wu_t, bu)
    assert out.shape == (B, S, H)
    assert jnp.allclose(out, ref, atol=1e-5, rtol=1e-5), "f32 mismatch vs. pure-JAX reference"

    # bf16 I/O path (halves HBM traffic; MXU-native on v6e/v7x) — loose check
    out_bf16 = bert_adapter(
        hidden_states.astype(jnp.bfloat16),
        wd_t.astype(jnp.bfloat16), bd.astype(jnp.bfloat16),
        wu_t.astype(jnp.bfloat16), bu.astype(jnp.bfloat16),
    )
    out_bf16 = jax.block_until_ready(out_bf16)
    assert out_bf16.dtype == jnp.bfloat16
    assert jnp.allclose(out_bf16.astype(jnp.float32), ref, atol=5e-2, rtol=5e-2), \
        "bf16 mismatch vs. pure-JAX reference"

    print("KERNEL_OK")
</pallas_src>

<mosaic_0001>
module attributes {stable_mosaic.version = 11 : i64} {
  func.func @adapter_kernel(%arg0: i32, %arg1: memref<16x32xf32, #tpu.memory_space<vmem>>, %arg2: memref<32x128xf32, #tpu.memory_space<vmem>>, %arg3: memref<1x128xf32, #tpu.memory_space<vmem>>, %arg4: memref<128x32xf32, #tpu.memory_space<vmem>>, %arg5: memref<1x32xf32, #tpu.memory_space<vmem>>, %arg6: memref<16x32xf32, #tpu.memory_space<vmem>>) attributes {dimension_semantics = [#tpu.dimension_semantics<parallel>], iteration_bounds = array<i64: 1>, scalar_prefetch = 0 : i64, scratch_operands = 0 : i64, tpu.core_type = #tpu.core_type<tc>, window_params = [{transform_indices = @transform_0, window_bounds = array<i64: 16, 32>}, {pipeline_mode = #tpu.pipeline_mode<synchronous>, transform_indices = @transform_1, window_bounds = array<i64: 32, 128>}, {pipeline_mode = #tpu.pipeline_mode<synchronous>, transform_indices = @transform_2, window_bounds = array<i64: 1, 128>}, {pipeline_mode = #tpu.pipeline_mode<synchronous>, transform_indices = @transform_3, window_bounds = array<i64: 128, 32>}, {pipeline_mode = #tpu.pipeline_mode<synchronous>, transform_indices = @transform_4, window_bounds = array<i64: 1, 32>}, {transform_indices = @transform_5, window_bounds = array<i64: 16, 32>}]} {
    %c0 = arith.constant 0 : index
    %c0_0 = arith.constant 0 : index
    %0 = vector.load %arg1[%c0, %c0_0] : memref<16x32xf32, #tpu.memory_space<vmem>>, vector<16x32xf32>
    %c0_1 = arith.constant 0 : index
    %c0_2 = arith.constant 0 : index
    %1 = vector.load %arg2[%c0_1, %c0_2] : memref<32x128xf32, #tpu.memory_space<vmem>>, vector<32x128xf32>
    %cst = arith.constant dense<0.000000e+00> : vector<16x128xf32>
    %2 = tpu.matmul %0, %1, %cst {dimension_numbers = #tpu.dot_dimension_numbers<[1], [0], [0], [1], [0, 0, 1, 1], [], []>} : vector<16x32xf32>, vector<32x128xf32>, vector<16x128xf32> -> vector<16x128xf32>
    %c0_3 = arith.constant 0 : index
    %c0_4 = arith.constant 0 : index
    %3 = vector.load %arg3[%c0_3, %c0_4] : memref<1x128xf32, #tpu.memory_space<vmem>>, vector<1x128xf32>
    %4 = vector.broadcast %3 : vector<1x128xf32> to vector<16x128xf32>
    %5 = arith.addf %2, %4 : vector<16x128xf32>
    %cst_5 = arith.constant 5.000000e-01 : f32
    %6 = vector.broadcast %cst_5 : f32 to vector<16x128xf32>
    %7 = arith.mulf %6, %5 : vector<16x128xf32>
    %cst_6 = arith.constant 0.707106769 : f32
    %8 = vector.broadcast %cst_6 : f32 to vector<16x128xf32>
    %9 = arith.mulf %5, %8 : vector<16x128xf32>
    %10 = math.erf %9 : vector<16x128xf32>
    %cst_7 = arith.constant 1.000000e+00 : f32
    %11 = vector.broadcast %cst_7 : f32 to vector<16x128xf32>
    %12 = arith.addf %11, %10 : vector<16x128xf32>
    %13 = arith.mulf %7, %12 : vector<16x128xf32>
    %c0_8 = arith.constant 0 : index
    %c0_9 = arith.constant 0 : index
    %14 = vector.load %arg4[%c0_8, %c0_9] : memref<128x32xf32, #tpu.memory_space<vmem>>, vector<128x32xf32>
    %cst_10 = arith.constant dense<0.000000e+00> : vector<16x32xf32>
    %15 = tpu.matmul %13, %14, %cst_10 {dimension_numbers = #tpu.dot_dimension_numbers<[1], [0], [0], [1], [0, 0, 1, 1], [], []>} : vector<16x128xf32>, vector<128x32xf32>, vector<16x32xf32> -> vector<16x32xf32>
    %c0_11 = arith.constant 0 : index
    %c0_12 = arith.constant 0 : index
    %16 = vector.load %arg5[%c0_11, %c0_12] : memref<1x32xf32, #tpu.memory_space<vmem>>, vector<1x32xf32>
    %17 = vector.broadcast %16 : vector<1x32xf32> to vector<16x32xf32>
    %18 = arith.addf %15, %17 : vector<16x32xf32>
    %19 = arith.addf %0, %18 : vector<16x32xf32>
    %c0_13 = arith.constant 0 : index
    %c0_14 = arith.constant 0 : index
    %20 = vector.load %arg6[%c0_13, %c0_14] : memref<16x32xf32, #tpu.memory_space<vmem>>, vector<16x32xf32>
    tpu.vector_store %arg6[%c0_13, %c0_14], %19 {strides = array<i32>} : memref<16x32xf32, #tpu.memory_space<vmem>>, vector<16x32xf32>,
    return
  }
  func.func @transform_0(%arg0: i32) -> (i32, i32) {
    %c0_i32 = arith.constant 0 : i32
    %c0_i32_0 = arith.constant 0 : i32
    return %arg0, %c0_i32 : i32, i32
  }
  func.func @transform_1(%arg0: i32) -> (i32, i32) {
    %c0_i32 = arith.constant 0 : i32
    %c0_i32_0 = arith.constant 0 : i32
    %c0_i32_1 = arith.constant 0 : i32
    return %c0_i32, %c0_i32_0 : i32, i32
  }
  func.func @transform_2(%arg0: i32) -> (i32, i32) {
    %c0_i32 = arith.constant 0 : i32
    %c0_i32_0 = arith.constant 0 : i32
    %c0_i32_1 = arith.constant 0 : i32
    return %c0_i32, %c0_i32_0 : i32, i32
  }
  func.func @transform_3(%arg0: i32) -> (i32, i32) {
    %c0_i32 = arith.constant 0 : i32
    %c0_i32_0 = arith.constant 0 : i32
    %c0_i32_1 = arith.constant 0 : i32
    return %c0_i32, %c0_i32_0 : i32, i32
  }
  func.func @transform_4(%arg0: i32) -> (i32, i32) {
    %c0_i32 = arith.constant 0 : i32
    %c0_i32_0 = arith.constant 0 : i32
    %c0_i32_1 = arith.constant 0 : i32
    return %c0_i32, %c0_i32_0 : i32, i32
  }
  func.func @transform_5(%arg0: i32) -> (i32, i32) {
    %c0_i32 = arith.constant 0 : i32
    %c0_i32_0 = arith.constant 0 : i32
    return %arg0, %c0_i32 : i32, i32
  }
}

module attributes {stable_mosaic.version = 11 : i64} {
  func.func @adapter_kernel(%arg0: i32, %arg1: memref<16x32xf32, #tpu.memory_space<vmem>>, %arg2: memref<32x128xf32, #tpu.memory_space<vmem>>, %arg3: memref<1x128xf32, #tpu.memory_space<vmem>>, %arg4: memref<128x32xf32, #tpu.memory_space<vmem>>, %arg5: memref<1x32xf32, #tpu.memory_space<vmem>>, %arg6: memref<16x32xf32, #tpu.memory_space<vmem>>) attributes {dimension_semantics = [#tpu.dimension_semantics<parallel>], iteration_bounds = array<i64: 1>, scalar_prefetch = 0 : i64, scratch_operands = 0 : i64, tpu.core_type = #tpu.core_type<tc>, window_params = [{transform_indices = @transform_0, window_bounds = array<i64: 16, 32>}, {pipeline_mode = #tpu.pipeline_mode<synchronous>, transform_indices = @transform_1, window_bounds = array<i64: 32, 128>}, {pipeline_mode = #tpu.pipeline_mode<synchronous>, transform_indices = @transform_2, window_bounds = array<i64: 1, 128>}, {pipeline_mode = #tpu.pipeline_mode<synchronous>, transform_indices = @transform_3, window_bounds = array<i64: 128, 32>}, {pipeline_mode = #tpu.pipeline_mode<synchronous>, transform_indices = @transform_4, window_bounds = array<i64: 1, 32>}, {transform_indices = @transform_5, window_bounds = array<i64: 16, 32>}]} {
    %c0 = arith.constant 0 : index
    %c0_0 = arith.constant 0 : index
    %0 = vector.load %arg1[%c0, %c0_0] : memref<16x32xf32, #tpu.memory_space<vmem>>, vector<16x32xf32>
    %c0_1 = arith.constant 0 : index
    %c0_2 = arith.constant 0 : index
    %1 = vector.load %arg2[%c0_1, %c0_2] : memref<32x128xf32, #tpu.memory_space<vmem>>, vector<32x128xf32>
    %cst = arith.constant dense<0.000000e+00> : vector<16x128xf32>
    %2 = tpu.matmul %0, %1, %cst {dimension_numbers = #tpu.dot_dimension_numbers<[1], [0], [0], [1], [0, 0, 1, 1], [], []>} : vector<16x32xf32>, vector<32x128xf32>, vector<16x128xf32> -> vector<16x128xf32>
    %c0_3 = arith.constant 0 : index
    %c0_4 = arith.constant 0 : index
    %3 = vector.load %arg3[%c0_3, %c0_4] : memref<1x128xf32, #tpu.memory_space<vmem>>, vector<1x128xf32>
    %4 = vector.broadcast %3 : vector<1x128xf32> to vector<16x128xf32>
    %5 = arith.addf %2, %4 : vector<16x128xf32>
    %cst_5 = arith.constant 5.000000e-01 : f32
    %6 = vector.broadcast %cst_5 : f32 to vector<16x128xf32>
    %7 = arith.mulf %6, %5 : vector<16x128xf32>
    %cst_6 = arith.constant 0.707106769 : f32
    %8 = vector.broadcast %cst_6 : f32 to vector<16x128xf32>
    %9 = arith.mulf %5, %8 : vector<16x128xf32>
    %10 = math.erf %9 : vector<16x128xf32>
    %cst_7 = arith.constant 1.000000e+00 : f32
    %11 = vector.broadcast %cst_7 : f32 to vector<16x128xf32>
    %12 = arith.addf %11, %10 : vector<16x128xf32>
    %13 = arith.mulf %7, %12 : vector<16x128xf32>
    %c0_8 = arith.constant 0 : index
    %c0_9 = arith.constant 0 : index
    %14 = vector.load %arg4[%c0_8, %c0_9] : memref<128x32xf32, #tpu.memory_space<vmem>>, vector<128x32xf32>
    %cst_10 = arith.constant dense<0.000000e+00> : vector<16x32xf32>
    %15 = tpu.matmul %13, %14, %cst_10 {dimension_numbers = #tpu.dot_dimension_numbers<[1], [0], [0], [1], [0, 0, 1, 1], [], []>} : vector<16x128xf32>, vector<128x32xf32>, vector<16x32xf32> -> vector<16x32xf32>
    %c0_11 = arith.constant 0 : index
    %c0_12 = arith.constant 0 : index
    %16 = vector.load %arg5[%c0_11, %c0_12] : memref<1x32xf32, #tpu.memory_space<vmem>>, vector<1x32xf32>
    %17 = vector.broadcast %16 : vector<1x32xf32> to vector<16x32xf32>
    %18 = arith.addf %15, %17 : vector<16x32xf32>
    %19 = arith.addf %0, %18 : vector<16x32xf32>
    %c0_13 = arith.constant 0 : index
    %c0_14 = arith.constant 0 : index
    %20 = vector.load %arg6[%c0_13, %c0_14] : memref<16x32xf32, #tpu.memory_space<vmem>>, vector<16x32xf32>
    tpu.vector_store %arg6[%c0_13, %c0_14], %19 {strides = array<i32>} : memref<16x32xf32, #tpu.memory_space<vmem>>, vector<16x32xf32>,
    return
  }
  func.func @transform_0(%arg0: i32) -> (i32, i32) {
    %c0_i32 = arith.constant 0 : i32
    %c0_i32_0 = arith.constant 0 : i32
    return %arg0, %c0_i32 : i32, i32
  }
  func.func @transform_1(%arg0: i32) -> (i32, i32) {
    %c0_i32 = arith.constant 0 : i32
    %c0_i32_0 = arith.constant 0 : i32
    %c0_i32_1 = arith.constant 0 : i32
    return %c0_i32, %c0_i32_0 : i32, i32
  }
  func.func @transform_2(%arg0: i32) -> (i32, i32) {
    %c0_i32 = arith.constant 0 : i32
    %c0_i32_0 = arith.constant 0 : i32
    %c0_i32_1 = arith.constant 0 : i32
    return %c0_i32, %c0_i32_0 : i32, i32
  }
  func.func @transform_3(%arg0: i32) -> (i32, i32) {
    %c0_i32 = arith.constant 0 : i32
    %c0_i32_0 = arith.constant 0 : i32
    %c0_i32_1 = arith.constant 0 : i32
    return %c0_i32, %c0_i32_0 : i32, i32
  }
  func.func @transform_4(%arg0: i32) -> (i32, i32) {
    %c0_i32 = arith.constant 0 : i32
    %c0_i32_0 = arith.constant 0 : i32
    %c0_i32_1 = arith.constant 0 : i32
    return %c0_i32, %c0_i32_0 : i32, i32
  }
  func.func @transform_5(%arg0: i32) -> (i32, i32) {
    %c0_i32 = arith.constant 0 : i32
    %c0_i32_0 = arith.constant 0 : i32
    return %arg0, %c0_i32 : i32, i32
  }
}

</mosaic_0001>

<bundles_post_ra>
// kernel: tpu_custom_call.1
= control target key start
LH: loop header
LB: loop body
LE: loop exit
PB: predicated region body
PF: predicated region fallthrough
CT: control target
= control target key end

     0   :  { %s419_s0 = inlined_call_operand.vmem [shape: f32[16,32], index: 0, kind: input, shape index: {}]   ;;  %s420_s1 = inlined_call_operand.vmem [shape: f32[32,128], index: 1, kind: input, shape index: {}]   ;;  %s421_s2 = inlined_call_operand.vmem [shape: f32[1,128], index: 2, kind: input, shape index: {}]   ;;  %s422_s3 = inlined_call_operand.vmem [shape: f32[128,32], index: 3, kind: input, shape index: {}]   ;;  %s423_s4 = inlined_call_operand.vmem [shape: f32[1,32], index: 4, kind: input, shape index: {}]   ;;  %s424_s5 = inlined_call_operand.hbm [shape: f32[16,32], index: 5, kind: output, shape index: {}]  }
   0x1   :  { %v26_v0 = vld [vmem:[%s420_s1 + $0x18] sm:$0xff]  ;;  %v25_v1 = vld [vmem:[%s420_s1 + $0x10] sm:$0xff]  ;;  %v24_v2 = vld [vmem:[%s420_s1 + $0x8] sm:$0xff] }
   0x2   :  { %50 = vmatpush.msra.mxu0 %v26_v0 }
   0x4   :  { %51 = vmatpush.msra.mxu0 %v25_v1 }
   0x5   :  { %10 = vsyncpa [#allocation3], 0  ;;  %v23_v3 = vld [vmem:[%s420_s1] sm:$0xff]  ;;  %vm31_vm0 = vcmask 261120   ;;  %v324_v5 = vld [vmem:[%s419_s0 + $0x8] sm:$0xff]  ;;  %s269_s10 = smov [#allocation2]  }
   0x6   :  { %52 = vmatpush.msra.mxu0 %v24_v2  ;;  %v317_v4 = vld [vmem:[%s419_s0] sm:$0xff]  ;;  %v164_v6 = vld [vmem:[%s422_s3 + $0x78] sm:$0xff]  ;;  %v163_v7 = vld [vmem:[%s422_s3 + $0x70] sm:$0xff]  ;;  %s200_s11 = sshll.u32 %s269_s10, 4  ;;  %s202_s14 = sshll.u32 %s424_s5, 4  ;;  %s201_s11 = int_to_ptr.vmem [resolvable:$true] %s200_s11  ;;  %s203_s14 = int_to_ptr.hbm [resolvable:$true] %s202_s14 }
   0x7   :  { %169 = vmatpush.msra.mxu1 %v164_v6  ;;  %218 = vmatpush.msra.mxu2 %v164_v6  ;;  %v162_v8 = vld [vmem:[%s422_s3 + $0x68] sm:$0xff]  ;;  %v161_v9 = vld [vmem:[%s422_s3 + $0x60] sm:$0xff]  ;;  %v160_v11 = vld [vmem:[%s422_s3 + $0x58] sm:$0xff]  ;;  %s271_s15 = smov 8  }
   0x8   :  { %53 = vmatpush.msra.mxu0 %v23_v3  ;;  %v237_v10 = vld [vmem:[%s421_s2] ss:$0 sm:$0xff]  ;;  %v159_v13 = vld [vmem:[%s422_s3 + $0x50] sm:$0xff]  ;;  %v158_v15 = vld [vmem:[%s422_s3 + $0x48] sm:$0xff] }
   0x9   :  { %214 = vmatmul.msk.f32.vlgmr.msra.gmra.mxu0 %vm31_vm0, %v317_v4  ;;  %170 = vmatpush.msra.mxu1 %v163_v7  ;;  %v157_v17 = vld [vmem:[%s422_s3 + $0x40] sm:$0xff]  ;;  %v156_v19 = vld [vmem:[%s422_s3 + $0x38] sm:$0xff]  ;;  %v155_v20 = vld [vmem:[%s422_s3 + $0x30] sm:$0xff] }
   0xa   :  { %219 = vmatpush.msra.mxu2 %v163_v7  ;;  %v154_v23 = vld [vmem:[%s422_s3 + $0x28] sm:$0xff]  ;;  %v153_v27 = vld [vmem:[%s422_s3 + $0x20] sm:$0xff]  ;;  %v152_v30 = vld [vmem:[%s422_s3 + $0x18] sm:$0xff] }
   0xb   :  { %171 = vmatpush.msra.mxu1 %v162_v8  ;;  %v151_v34 = vld [vmem:[%s422_s3 + $0x10] sm:$0xff]  ;;  %v150_v37 = vld [vmem:[%s422_s3 + $0x8] sm:$0xff]  ;;  %v149_v42 = vld [vmem:[%s422_s3] sm:$0xff] }
   0xc   :  { %220 = vmatpush.msra.mxu2 %v162_v8 }
   0xd   :  { %172 = vmatpush.msra.mxu1 %v161_v9 }
   0xe   :  { %221 = vmatpush.msra.mxu2 %v161_v9 }
   0xf   :  { %173 = vmatpush.msra.mxu1 %v160_v11 }
  0x10   :  { %222 = vmatpush.msra.mxu2 %v160_v11 }
  0x11   :  { %215 = vmatmul.msk.f32.gmra.mxu0 %vm31_vm0, %v324_v5  ;;  %174 = vmatpush.msra.mxu1 %v159_v13 }
  0x12   :  { %223 = vmatpush.msra.mxu2 %v159_v13 }
  0x13   :  { %175 = vmatpush.msra.mxu1 %v158_v15 }
  0x14   :  { %224 = vmatpush.msra.mxu2 %v158_v15 }
  0x15   :  { %176 = vmatpush.msra.mxu1 %v157_v17 }
  0x16   :  { %225 = vmatpush.msra.mxu2 %v157_v17 }
  0x17   :  { %177 = vmatpush.msra.mxu1 %v156_v19 }
  0x18   :  { %226 = vmatpush.msra.mxu2 %v156_v19 }
  0x19   :  { %178 = vmatpush.msra.mxu1 %v155_v20 }
  0x1a   :  { %227 = vmatpush.msra.mxu2 %v155_v20 }
  0x1b   :  { %179 = vmatpush.msra.mxu1 %v154_v23 }
  0x1c   :  { %228 = vmatpush.msra.mxu2 %v154_v23 }
  0x1d   :  { %180 = vmatpush.msra.mxu1 %v153_v27 }
  0x1e   :  { %229 = vmatpush.msra.mxu2 %v153_v27 }
  0x1f   :  { %181 = vmatpush.msra.mxu1 %v152_v30 }
  0x20   :  { %230 = vmatpush.msra.mxu2 %v152_v30 }
  0x21   :  { %182 = vmatpush.msra.mxu1 %v151_v34 }
  0x22   :  { %231 = vmatpush.msra.mxu2 %v151_v34 }
  0x23   :  { %183 = vmatpush.msra.mxu1 %v150_v37 }
  0x24   :  { %232 = vmatpush.msra.mxu2 %v150_v37 }
  0x25   :  { %184 = vmatpush.msra.mxu1 %v149_v42 }
  0x26   :  { %233 = vmatpush.msra.mxu2 %v149_v42 }
  0x86   :  { %v55_v12 = vpop.f32.mrf.mxu0 }
  0x87   :  { %v349_v14 = vadd.f32 %v237_v10, %v55_v12 }
  0x89   :  { %v355_v16 = vmul.f32 0.70710677, %v349_v14 }
  0x8b   :  { %v65_v18 = vmul.f32 %v355_v16, %v355_v16 }
  0x8d   :  { %v368_v21 = vmin.f32 %v65_v18, 16.0 }
  0x8e   :  { %v58_v22 = vpop.f32.mrf.mxu0 }
  0x8f   :  { %v67_v24 = vmul.f32 2.1237322e-06, %v368_v21  ;;  %v374_v25 = vadd.f32 %v237_v10, %v58_v22  ;;  %v78_v26 = vmul.f32 3.8918573e-05, %v368_v21 }
  0x91   :  { %v68_v28 = vadd.f32 0.00028619796, %v67_v24  ;;  %v381_v29 = vmul.f32 0.70710677, %v374_v25  ;;  %v79_v31 = vadd.f32 0.001143296, %v78_v26 }
  0x93   :  { %v69_v32 = vmul.f32 %v68_v28, %v368_v21  ;;  %v105_v33 = vmul.f32 %v381_v29, %v381_v29  ;;  %v80_v35 = vmul.f32 %v79_v31, %v368_v21 }
  0x95   :  { %v106_v36 = vmin.f32 %v105_v33, 16.0  ;;  %v81_v38 = vadd.f32 0.014752088, %v80_v35  ;;  %v70_v39 = vadd.f32 0.0036580483, %v69_v32  ;;  %v61_v35 = vmul.f32 0.5, %v349_v14 }
  0x96   :  { %v238_v14 = vld [vmem:[%s423_s4] ss:$0 sm:$0xff]  ;;  %s270_s4 = smov 128  }
  0x97   :  { %v107_v40 = vmul.f32 2.1237322e-06, %v106_v36  ;;  %v118_v41 = vmul.f32 3.8918573e-05, %v106_v36  ;;  %v82_v43 = vmul.f32 %v81_v38, %v368_v21  ;;  %v71_v47 = vmul.f32 %v70_v39, %v368_v21 }
  0x99   :  { %v108_v44 = vadd.f32 0.00028619796, %v107_v40  ;;  %v119_v45 = vadd.f32 0.001143296, %v118_v41  ;;  %v83_v46 = vadd.f32 0.112945676, %v82_v43 }
  0x9a   :  { %v72_v54 = vadd.f32 0.05243302, %v71_v47  ;;  %v62_v43 = vmul.f32 0.5, %v374_v25 }
  0x9b   :  { %v109_v48 = vmul.f32 %v108_v44, %v106_v36  ;;  %v120_v49 = vmul.f32 %v119_v45, %v106_v36  ;;  %v84_v50 = vmul.f32 %v83_v46, %v368_v21 }
  0x9c   :  { %v73_v60 = vmul.f32 %v72_v54, %v368_v21 }
  0x9d   :  { %v121_v51 = vadd.f32 0.014752088, %v120_v49  ;;  %v110_v52 = vadd.f32 0.0036580483, %v109_v48  ;;  %v85_v53 = vadd.f32 0.4994258, %v84_v50 }
  0x9e   :  { %v74_v0 = vadd.f32 0.18741608, %v73_v60 }
  0x9f   :  { %v122_v55 = vmul.f32 %v121_v51, %v106_v36  ;;  %v86_v56 = vmul.f32 %v85_v53, %v368_v21  ;;  %v111_v58 = vmul.f32 %v110_v52, %v106_v36 }
  0xa0   :  { %v75_v7 = vmul.f32 %v74_v0, %v368_v21 }
  0xa1   :  { %v123_v57 = vadd.f32 0.112945676, %v122_v55  ;;  %v87_v59 = vadd.f32 1.0, %v86_v56  ;;  %v112_v63 = vadd.f32 0.05243302, %v111_v58 }
  0xa2   :  { %v76_v12 = vadd.f32 1.1283791, %v75_v7 }
  0xa3   :  { %v124_v61 = vmul.f32 %v123_v57, %v106_v36  ;;  %239 = vrcp.f32 %v87_v59  ;;  %v113_v6 = vmul.f32 %v112_v63, %v106_v36  ;;  %v99_v11 = vand.u32 2147483648, %v87_v59 }
  0xa4   :  { %v97_v15 = vand.u32 2147483647, %v87_v59  ;;  %vm93_vm2 = vweird.f32 %v87_v59  ;;  %v77_v23 = vmul.f32 %v76_v12, %v355_v16 }
  0xa5   :  { %v125_v62 = vadd.f32 0.4994258, %v124_v61  ;;  %v114_v10 = vadd.f32 0.18741608, %v113_v6  ;;  %v100_v20 = vor.u32 1.1754944e-38, %v99_v11 }
  0xa6   :  { %vm98_vm4 = vcmp.eq.f32.partialorder %v97_v15, 8.507059e+37 }
  0xa7   :  { %v126_v1 = vmul.f32 %v125_v62, %v106_v36  ;;  %v115_v19 = vmul.f32 %v114_v10, %v106_v36 }
  0xa9   :  { %v127_v2 = vadd.f32 1.0, %v126_v1  ;;  %v240_v3 = vpop.eup %239  ;;  %v116_v30 = vadd.f32 1.1283791, %v115_v19 }
  0xaa   :  { %v89_v8 = vmul.f32 %v240_v3, %v87_v59  ;;  %vm94_vm1 = vweird.f32 %v240_v3 }
  0xab   :  { %241 = vrcp.f32 %v127_v2  ;;  %vm95_vm3 = vmor %vm93_vm2, %vm94_vm1  ;;  %v139_v28 = vand.u32 2147483648, %v127_v2  ;;  %v137_v32 = vand.u32 2147483647, %v127_v2  ;;  %vm133_vm6 = vweird.f32 %v127_v2 }
  0xac   :  { %v90_v9 = vsub.f32 1.0, %v89_v8  ;;  %v117_v16 = vmul.f32 %v116_v30, %v381_v29 }
  0xad   :  { %v140_v37 = vor.u32 1.1754944e-38, %v139_v28  ;;  %vm138_vm8 = vcmp.eq.f32.partialorder %v137_v32, 8.507059e+37 }
  0xae   :  { %v91_v13 = vmul.f32 %v240_v3, %v90_v9 }
  0xb0   :  { %v92_v18 = vadd.f32 %v240_v3, %v91_v13 }
  0xb1   :  { %v242_v17 = vpop.eup %241 }
  0xb2   :  { %v129_v22 = vmul.f32 %v242_v17, %v127_v2  ;;  %v96_v24 = vsel %vm95_vm3, %v240_v3, %v92_v18  ;;  %vm134_vm5 = vweird.f32 %v242_v17 }
  0xb3   :  { %v101_v21 = vsel %vm98_vm4, %v100_v20, %v96_v24  ;;  %vm135_vm7 = vmor %vm133_vm6, %vm134_vm5 }
  0xb4   :  { %v130_v26 = vsub.f32 1.0, %v129_v22  ;;  %v102_v27 = vmul.f32 %v101_v21, %v77_v23 }
  0xb6   :  { %v131_v31 = vmul.f32 %v242_v17, %v130_v26  ;;  %v216_v33 = vclamps-f32 %v102_v27, 1.0 }
  0xb8   :  { %v132_v34 = vadd.f32 %v242_v17, %v131_v31  ;;  %v145_v36 = vadd.f32 1.0, %v216_v33 }
  0xba   :  { %v136_v38 = vsel %vm135_vm7, %v242_v17, %v132_v34  ;;  %v147_v39 = vmul.f32 %v145_v36, %v61_v35 }
  0xbb   :  { %v141_v40 = vsel %vm138_vm8, %v140_v37, %v136_v38 }
  0xbc   :  { %v142_v41 = vmul.f32 %v141_v40, %v117_v16  ;;  %185 = vmatmul.f32.vlgmr.msra.gmra.mxu1 %v147_v39 }
  0xbe   :  { %v217_v42 = vclamps-f32 %v142_v41, 1.0 }
  0xc0   :  { %v146_v44 = vadd.f32 1.0, %v217_v42 }
  0xc2   :  { %v148_v45 = vmul.f32 %v146_v44, %v62_v43 }
  0xc4   :  { %188 = vmatmul.f32.vlgmr.msra.gmra.mxu2 %v148_v45 }
 0x139   :  { %v186_v46 = vpop.f32.mrf.mxu1 }
 0x13a   :  { %v187_v47 = vadd.f32 %v238_v14, %v186_v46 }
 0x13c   :  { %v192_v29 = vadd.f32 %v187_v47, %v317_v4 }
 0x13e   :  { %194 = vst.msk [vmem:[#allocation2] sm:$0xff] %vm31_vm0, %v192_v29 }
 0x147   :  { %v189_v25 = vpop.f32.mrf.mxu2 }
 0x148   :  { %v190_v48 = vadd.f32 %v238_v14, %v189_v25 }
 0x14a   :  { %v193_v49 = vadd.f32 %v190_v48, %v324_v5 }
 0x14c   :  { %195 = vst.msk [vmem:[#allocation2 + $0x8] sm:$0xff] %vm31_vm0, %v193_v49 }
 0x14d   :  { %208 = dma.vmem_to_hbm [thread:$0]  %s201_s11, 256, %s203_s14, [#allocation3], %s270_s4, %s270_s4, %s271_s15  }
 0x14e   :  { %267 = dma.done.wait [#allocation3], 256  }
 0x14f   :  { %268 = vsyncadd [#allocation3], 4294967040 }
 0x150   :  { %213 = vsyncpa [#allocation3], 1 }

// kernel: tpu_custom_call.1
= control target key start
LH: loop header
LB: loop body
LE: loop exit
PB: predicated region body
PF: predicated region fallthrough
CT: control target
= control target key end

     0   :  { %s419_s0 = inlined_call_operand.vmem [shape: f32[16,32], index: 0, kind: input, shape index: {}]   ;;  %s420_s1 = inlined_call_operand.vmem [shape: f32[32,128], index: 1, kind: input, shape index: {}]   ;;  %s421_s2 = inlined_call_operand.vmem [shape: f32[1,128], index: 2, kind: input, shape index: {}]   ;;  %s422_s3 = inlined_call_operand.vmem [shape: f32[128,32], index: 3, kind: input, shape index: {}]   ;;  %s423_s4 = inlined_call_operand.vmem [shape: f32[1,32], index: 4, kind: input, shape index: {}]   ;;  %s424_s5 = inlined_call_operand.hbm [shape: f32[16,32], index: 5, kind: output, shape index: {}]  }
   0x1   :  { %v26_v0 = vld [vmem:[%s420_s1 + $0x18] sm:$0xff]  ;;  %v25_v1 = vld [vmem:[%s420_s1 + $0x10] sm:$0xff]  ;;  %v24_v2 = vld [vmem:[%s420_s1 + $0x8] sm:$0xff] }
   0x2   :  { %50 = vmatpush.msra.mxu0 %v26_v0 }
   0x4   :  { %51 = vmatpush.msra.mxu0 %v25_v1 }
   0x5   :  { %10 = vsyncpa [#allocation3], 0  ;;  %v23_v3 = vld [vmem:[%s420_s1] sm:$0xff]  ;;  %vm31_vm0 = vcmask 261120   ;;  %v324_v5 = vld [vmem:[%s419_s0 + $0x8] sm:$0xff]  ;;  %s269_s10 = smov [#allocation2]  }
   0x6   :  { %52 = vmatpush.msra.mxu0 %v24_v2  ;;  %v317_v4 = vld [vmem:[%s419_s0] sm:$0xff]  ;;  %v164_v6 = vld [vmem:[%s422_s3 + $0x78] sm:$0xff]  ;;  %v163_v7 = vld [vmem:[%s422_s3 + $0x70] sm:$0xff]  ;;  %s200_s11 = sshll.u32 %s269_s10, 4  ;;  %s202_s14 = sshll.u32 %s424_s5, 4  ;;  %s201_s11 = int_to_ptr.vmem [resolvable:$true] %s200_s11  ;;  %s203_s14 = int_to_ptr.hbm [resolvable:$true] %s202_s14 }
   0x7   :  { %169 = vmatpush.msra.mxu1 %v164_v6  ;;  %218 = vmatpush.msra.mxu2 %v164_v6  ;;  %v162_v8 = vld [vmem:[%s422_s3 + $0x68] sm:$0xff]  ;;  %v161_v9 = vld [vmem:[%s422_s3 + $0x60] sm:$0xff]  ;;  %v160_v11 = vld [vmem:[%s422_s3 + $0x58] sm:$0xff]  ;;  %s271_s15 = smov 8  }
   0x8   :  { %53 = vmatpush.msra.mxu0 %v23_v3  ;;  %v237_v10 = vld [vmem:[%s421_s2] ss:$0 sm:$0xff]  ;;  %v159_v13 = vld [vmem:[%s422_s3 + $0x50] sm:$0xff]  ;;  %v158_v15 = vld [vmem:[%s422_s3 + $0x48] sm:$0xff] }
   0x9   :  { %214 = vmatmul.msk.f32.vlgmr.msra.gmra.mxu0 %vm31_vm0, %v317_v4  ;;  %170 = vmatpush.msra.mxu1 %v163_v7  ;;  %v157_v17 = vld [vmem:[%s422_s3 + $0x40] sm:$0xff]  ;;  %v156_v19 = vld [vmem:[%s422_s3 + $0x38] sm:$0xff]  ;;  %v155_v20 = vld [vmem:[%s422_s3 + $0x30] sm:$0xff] }
   0xa   :  { %219 = vmatpush.msra.mxu2 %v163_v7  ;;  %v154_v23 = vld [vmem:[%s422_s3 + $0x28] sm:$0xff]  ;;  %v153_v27 = vld [vmem:[%s422_s3 + $0x20] sm:$0xff]  ;;  %v152_v30 = vld [vmem:[%s422_s3 + $0x18] sm:$0xff] }
   0xb   :  { %171 = vmatpush.msra.mxu1 %v162_v8  ;;  %v151_v34 = vld [vmem:[%s422_s3 + $0x10] sm:$0xff]  ;;  %v150_v37 = vld [vmem:[%s422_s3 + $0x8] sm:$0xff]  ;;  %v149_v42 = vld [vmem:[%s422_s3] sm:$0xff] }
   0xc   :  { %220 = vmatpush.msra.mxu2 %v162_v8 }
   0xd   :  { %172 = vmatpush.msra.mxu1 %v161_v9 }
   0xe   :  { %221 = vmatpush.msra.mxu2 %v161_v9 }
   0xf   :  { %173 = vmatpush.msra.mxu1 %v160_v11 }
  0x10   :  { %222 = vmatpush.msra.mxu2 %v160_v11 }
  0x11   :  { %215 = vmatmul.msk.f32.gmra.mxu0 %vm31_vm0, %v324_v5  ;;  %174 = vmatpush.msra.mxu1 %v159_v13 }
  0x12   :  { %223 = vmatpush.msra.mxu2 %v159_v13 }
  0x13   :  { %175 = vmatpush.msra.mxu1 %v158_v15 }
  0x14   :  { %224 = vmatpush.msra.mxu2 %v158_v15 }
  0x15   :  { %176 = vmatpush.msra.mxu1 %v157_v17 }
  0x16   :  { %225 = vmatpush.msra.mxu2 %v157_v17 }
  0x17   :  { %177 = vmatpush.msra.mxu1 %v156_v19 }
  0x18   :  { %226 = vmatpush.msra.mxu2 %v156_v19 }
  0x19   :  { %178 = vmatpush.msra.mxu1 %v155_v20 }
  0x1a   :  { %227 = vmatpush.msra.mxu2 %v155_v20 }
  0x1b   :  { %179 = vmatpush.msra.mxu1 %v154_v23 }
  0x1c   :  { %228 = vmatpush.msra.mxu2 %v154_v23 }
  0x1d   :  { %180 = vmatpush.msra.mxu1 %v153_v27 }
  0x1e   :  { %229 = vmatpush.msra.mxu2 %v153_v27 }
  0x1f   :  { %181 = vmatpush.msra.mxu1 %v152_v30 }
  0x20   :  { %230 = vmatpush.msra.mxu2 %v152_v30 }
  0x21   :  { %182 = vmatpush.msra.mxu1 %v151_v34 }
  0x22   :  { %231 = vmatpush.msra.mxu2 %v151_v34 }
  0x23   :  { %183 = vmatpush.msra.mxu1 %v150_v37 }
  0x24   :  { %232 = vmatpush.msra.mxu2 %v150_v37 }
  0x25   :  { %184 = vmatpush.msra.mxu1 %v149_v42 }
  0x26   :  { %233 = vmatpush.msra.mxu2 %v149_v42 }
  0x86   :  { %v55_v12 = vpop.f32.mrf.mxu0 }
  0x87   :  { %v349_v14 = vadd.f32 %v237_v10, %v55_v12 }
  0x89   :  { %v355_v16 = vmul.f32 0.70710677, %v349_v14 }
  0x8b   :  { %v65_v18 = vmul.f32 %v355_v16, %v355_v16 }
  0x8d   :  { %v368_v21 = vmin.f32 %v65_v18, 16.0 }
  0x8e   :  { %v58_v22 = vpop.f32.mrf.mxu0 }
  0x8f   :  { %v67_v24 = vmul.f32 2.1237322e-06, %v368_v21  ;;  %v374_v25 = vadd.f32 %v237_v10, %v58_v22  ;;  %v78_v26 = vmul.f32 3.8918573e-05, %v368_v21 }
  0x91   :  { %v68_v28 = vadd.f32 0.00028619796, %v67_v24  ;;  %v381_v29 = vmul.f32 0.70710677, %v374_v25  ;;  %v79_v31 = vadd.f32 0.001143296, %v78_v26 }
  0x93   :  { %v69_v32 = vmul.f32 %v68_v28, %v368_v21  ;;  %v105_v33 = vmul.f32 %v381_v29, %v381_v29  ;;  %v80_v35 = vmul.f32 %v79_v31, %v368_v21 }
  0x95   :  { %v106_v36 = vmin.f32 %v105_v33, 16.0  ;;  %v81_v38 = vadd.f32 0.014752088, %v80_v35  ;;  %v70_v39 = vadd.f32 0.0036580483, %v69_v32  ;;  %v61_v35 = vmul.f32 0.5, %v349_v14 }
  0x96   :  { %v238_v14 = vld [vmem:[%s423_s4] ss:$0 sm:$0xff]  ;;  %s270_s4 = smov 128  }
  0x97   :  { %v107_v40 = vmul.f32 2.1237322e-06, %v106_v36  ;;  %v118_v41 = vmul.f32 3.8918573e-05, %v106_v36  ;;  %v82_v43 = vmul.f32 %v81_v38, %v368_v21  ;;  %v71_v47 = vmul.f32 %v70_v39, %v368_v21 }
  0x99   :  { %v108_v44 = vadd.f32 0.00028619796, %v107_v40  ;;  %v119_v45 = vadd.f32 0.001143296, %v118_v41  ;;  %v83_v46 = vadd.f32 0.112945676, %v82_v43 }
  0x9a   :  { %v72_v54 = vadd.f32 0.05243302, %v71_v47  ;;  %v62_v43 = vmul.f32 0.5, %v374_v25 }
  0x9b   :  { %v109_v48 = vmul.f32 %v108_v44, %v106_v36  ;;  %v120_v49 = vmul.f32 %v119_v45, %v106_v36  ;;  %v84_v50 = vmul.f32 %v83_v46, %v368_v21 }
  0x9c   :  { %v73_v60 = vmul.f32 %v72_v54, %v368_v21 }
  0x9d   :  { %v121_v51 = vadd.f32 0.014752088, %v120_v49  ;;  %v110_v52 = vadd.f32 0.0036580483, %v109_v48  ;;  %v85_v53 = vadd.f32 0.4994258, %v84_v50 }
  0x9e   :  { %v74_v0 = vadd.f32 0.18741608, %v73_v60 }
  0x9f   :  { %v122_v55 = vmul.f32 %v121_v51, %v106_v36  ;;  %v86_v56 = vmul.f32 %v85_v53, %v368_v21  ;;  %v111_v58 = vmul.f32 %v110_v52, %v106_v36 }
  0xa0   :  { %v75_v7 = vmul.f32 %v74_v0, %v368_v21 }
  0xa1   :  { %v123_v57 = vadd.f32 0.112945676, %v122_v55  ;;  %v87_v59 = vadd.f32 1.0, %v86_v56  ;;  %v112_v63 = vadd.f32 0.05243302, %v111_v58 }
  0xa2   :  { %v76_v12 = vadd.f32 1.1283791, %v75_v7 }
  0xa3   :  { %v124_v61 = vmul.f32 %v123_v57, %v106_v36  ;;  %239 = vrcp.f32 %v87_v59  ;;  %v113_v6 = vmul.f32 %v112_v63, %v106_v36  ;;  %v99_v11 = vand.u32 2147483648, %v87_v59 }
  0xa4   :  { %v97_v15 = vand.u32 2147483647, %v87_v59  ;;  %vm93_vm2 = vweird.f32 %v87_v59  ;;  %v77_v23 = vmul.f32 %v76_v12, %v355_v16 }
  0xa5   :  { %v125_v62 = vadd.f32 0.4994258, %v124_v61  ;;  %v114_v10 = vadd.f32 0.18741608, %v113_v6  ;;  %v100_v20 = vor.u32 1.1754944e-38, %v99_v11 }
  0xa6   :  { %vm98_vm4 = vcmp.eq.f32.partialorder %v97_v15, 8.507059e+37 }
  0xa7   :  { %v126_v1 = vmul.f32 %v125_v62, %v106_v36  ;;  %v115_v19 = vmul.f32 %v114_v10, %v106_v36 }
  0xa9   :  { %v127_v2 = vadd.f32 1.0, %v126_v1  ;;  %v240_v3 = vpop.eup %239  ;;  %v116_v30 = vadd.f32 1.1283791, %v115_v19 }
  0xaa   :  { %v89_v8 = vmul.f32 %v240_v3, %v87_v59  ;;  %vm94_vm1 = vweird.f32 %v240_v3 }
  0xab   :  { %241 = vrcp.f32 %v127_v2  ;;  %vm95_vm3 = vmor %vm93_vm2, %vm94_vm1  ;;  %v139_v28 = vand.u32 2147483648, %v127_v2  ;;  %v137_v32 = vand.u32 2147483647, %v127_v2  ;;  %vm133_vm6 = vweird.f32 %v127_v2 }
  0xac   :  { %v90_v9 = vsub.f32 1.0, %v89_v8  ;;  %v117_v16 = vmul.f32 %v116_v30, %v381_v29 }
  0xad   :  { %v140_v37 = vor.u32 1.1754944e-38, %v139_v28  ;;  %vm138_vm8 = vcmp.eq.f32.partialorder %v137_v32, 8.507059e+37 }
  0xae   :  { %v91_v13 = vmul.f32 %v240_v3, %v90_v9 }
  0xb0   :  { %v92_v18 = vadd.f32 %v240_v3, %v91_v13 }
  0xb1   :  { %v242_v17 = vpop.eup %241 }
  0xb2   :  { %v129_v22 = vmul.f32 %v242_v17, %v127_v2  ;;  %v96_v24 = vsel %vm95_vm3, %v240_v3, %v92_v18  ;;  %vm134_vm5 = vweird.f32 %v242_v17 }
  0xb3   :  { %v101_v21 = vsel %vm98_vm4, %v100_v20, %v96_v24  ;;  %vm135_vm7 = vmor %vm133_vm6, %vm134_vm5 }
  0xb4   :  { %v130_v26 = vsub.f32 1.0, %v129_v22  ;;  %v102_v27 = vmul.f32 %v101_v21, %v77_v23 }
  0xb6   :  { %v131_v31 = vmul.f32 %v242_v17, %v130_v26  ;;  %v216_v33 = vclamps-f32 %v102_v27, 1.0 }
  0xb8   :  { %v132_v34 = vadd.f32 %v242_v17, %v131_v31  ;;  %v145_v36 = vadd.f32 1.0, %v216_v33 }
  0xba   :  { %v136_v38 = vsel %vm135_vm7, %v242_v17, %v132_v34  ;;  %v147_v39 = vmul.f32 %v145_v36, %v61_v35 }
  0xbb   :  { %v141_v40 = vsel %vm138_vm8, %v140_v37, %v136_v38 }
  0xbc   :  { %v142_v41 = vmul.f32 %v141_v40, %v117_v16  ;;  %185 = vmatmul.f32.vlgmr.msra.gmra.mxu1 %v147_v39 }
  0xbe   :  { %v217_v42 = vclamps-f32 %v142_v41, 1.0 }
  0xc0   :  { %v146_v44 = vadd.f32 1.0, %v217_v42 }
  0xc2   :  { %v148_v45 = vmul.f32 %v146_v44, %v62_v43 }
  0xc4   :  { %188 = vmatmul.f32.vlgmr.msra.gmra.mxu2 %v148_v45 }
 0x139   :  { %v186_v46 = vpop.f32.mrf.mxu1 }
 0x13a   :  { %v187_v47 = vadd.f32 %v238_v14, %v186_v46 }
 0x13c   :  { %v192_v29 = vadd.f32 %v187_v47, %v317_v4 }
 0x13e   :  { %194 = vst.msk [vmem:[#allocation2] sm:$0xff] %vm31_vm0, %v192_v29 }
 0x147   :  { %v189_v25 = vpop.f32.mrf.mxu2 }
 0x148   :  { %v190_v48 = vadd.f32 %v238_v14, %v189_v25 }
 0x14a   :  { %v193_v49 = vadd.f32 %v190_v48, %v324_v5 }
 0x14c   :  { %195 = vst.msk [vmem:[#allocation2 + $0x8] sm:$0xff] %vm31_vm0, %v193_v49 }
 0x14d   :  { %208 = dma.vmem_to_hbm [thread:$0]  %s201_s11, 256, %s203_s14, [#allocation3], %s270_s4, %s270_s4, %s271_s15  }
 0x14e   :  { %267 = dma.done.wait [#allocation3], 256  }
 0x14f   :  { %268 = vsyncadd [#allocation3], 4294967040 }
 0x150   :  { %213 = vsyncpa [#allocation3], 1 }

</bundles_post_ra>
